<compile_context>
chip_gen: v6e
topology: v6e:2x2x1
jax: 0.10.0
libtpu: 0.0.40
codegen_flags: <defaults>
</compile_context>

<pallas_src>
import functools
import math

import jax
import jax.numpy as jnp
from jax.experimental import pallas as pl
from jax.experimental.pallas import tpu as pltpu

LN_EPS = 1e-5  # torch.nn.LayerNorm default


# ----------------------------- helpers ---------------------------------------
def _choose_batch_block(batch, target=8):
    """Largest divisor of `batch` that is <= target (amortizes weight DMA)."""
    for t in range(min(batch, target), 0, -1):
        if batch % t == 0:
            return t
    return 1


def _erf(z):
    # Abramowitz & Stegun 7.1.26, |err| < 1.5e-7 (fp32-accurate).
    # TODO(synk): Mosaic has no erf primitive; exact-GELU uses this rational approx.
    a1, a2, a3, a4, a5 = 0.254829592, -0.284496736, 1.421413741, -1.453152027, 1.061405429
    pp = 0.3275911
    s = jnp.where(z >= 0.0, 1.0, -1.0)
    za = jnp.abs(z)
    t = pl.reciprocal(1.0 + pp * za, approx=False)
    poly = ((((a5 * t + a4) * t + a3) * t + a2) * t + a1) * t
    return s * (1.0 - poly * jnp.exp(-za * za))


def _gelu_exact(x):
    # torch.nn.GELU default (erf form); kept exact (not tanh-approx) for parity.
    return 0.5 * x * (1.0 + _erf(x * (1.0 / math.sqrt(2.0))))


def _ln(v, w, b):
    mu = jnp.mean(v, axis=-1, keepdims=True)
    var = jnp.mean((v - mu) ** 2, axis=-1, keepdims=True)
    return (v - mu) * jax.lax.rsqrt(var + LN_EPS) * w + b


# --------------------------------- kernels -----------------------------------
def _embed_kernel(p_ref, w_ref, b_ref, pos_ref, o_ref, *, matmul_dtype):
    """Patch-embed linear + positional-embedding add for a batch block of images."""
    Bt, N, K = p_ref.shape
    D = w_ref.shape[1]
    x = jnp.dot(p_ref[...].reshape(Bt * N, K).astype(matmul_dtype), w_ref[...],
                preferred_element_type=jnp.float32)
    x = (x + b_ref[...]).reshape(Bt, N, D) + pos_ref[...][None]
    o_ref[...] = x.astype(o_ref.dtype)


def patch_embed(patches, w, b, pos, matmul_dtype):
    """patches: (B, N, K), w: (K, D), b: (D,), pos: (1, N, D) -> (B, N, D)."""
    B, N, K = patches.shape
    D = w.shape[1]
    Bt = _choose_batch_block(B)
    return pl.pallas_call(
        functools.partial(_embed_kernel, matmul_dtype=matmul_dtype),
        out_shape=jax.ShapeDtypeStruct((B, N, D), jnp.float32),
        grid=(B // Bt,),
        in_specs=[pl.BlockSpec((Bt, N, K), lambda b: (b, 0, 0)),
                  pl.BlockSpec((K, D), lambda b: (0, 0)),
                  pl.BlockSpec((1, D), lambda b: (0, 0)),
                  pl.BlockSpec((N, D), lambda b: (0, 0))],
        out_specs=pl.BlockSpec((Bt, N, D), lambda b: (b, 0, 0)),
        compiler_params=pltpu.CompilerParams(dimension_semantics=("parallel",)),
    )(patches, w.astype(matmul_dtype), b.reshape(1, D), pos.reshape(N, D))


def _encoder_kernel(tok_ref, ln1w_ref, ln1b_ref, wqkv_ref, bqkv_ref, wproj_ref,
                    bproj_ref, ln2w_ref, ln2b_ref, wfc1_ref, bfc1_ref, wfc2_ref,
                    bfc2_ref, nw_ref, nb_ref, o_ref, x_scr,
                    *, num_heads, matmul_dtype):
    """One (batch_block, layer) grid step of the fused ViT stack.

    The residual stream for Bt images stays resident in `x_scr` (VMEM, f32) across the
    depth axis; per-layer weights stream in per step; final LayerNorm on the last step.
    """
    d = pl.program_id(1)
    Bt, N, D = tok_ref.shape
    nh = num_heads
    hd = D // nh
    cd = matmul_dtype

    @pl.when(d == 0)
    def _():
        x_scr[...] = tok_ref[...].reshape(Bt * N, D).astype(jnp.float32)

    x = x_scr[...]                                            # (Bt*N, D) f32 residual

    # ----- attention (pre-norm) -----
    h = _ln(x, ln1w_ref[0], ln1b_ref[0]).astype(cd)           # (Bt*N, D)
    # single lane-dense qkv projection; attention scale pre-folded into q columns
    qkv = jnp.dot(h, wqkv_ref[0], preferred_element_type=jnp.float32) + bqkv_ref[0]

    # per-head attention core (scores/softmax/PV are inherently per-head);
    # head slices are static lane slices of the dense qkv result.
    heads = []
    for hh in range(nh):
        q_h = qkv[:, hh * hd:(hh + 1) * hd].reshape(Bt, N, hd).astype(cd)
        k_h = qkv[:, D + hh * hd:D + (hh + 1) * hd].reshape(Bt, N, hd).astype(cd)
        v_h = qkv[:, 2 * D + hh * hd:2 * D + (hh + 1) * hd].reshape(Bt, N, hd).astype(cd)
        s = jnp.einsum("bqc,bkc->bqk", q_h, k_h,
                       preferred_element_type=jnp.float32)    # (Bt, N, N)
        s = s - jnp.max(s, axis=-1, keepdims=True)
        e = jnp.exp(s)
        p = e * pl.reciprocal(jnp.sum(e, axis=-1, keepdims=True), approx=True)
        o_h = jnp.einsum("bqk,bkc->bqc", p.astype(cd), v_h,
                         preferred_element_type=jnp.float32)  # (Bt, N, hd)
        heads.append(o_h.reshape(Bt * N, hd))
    # head-major lane merge, then ONE dense output projection
    o = jnp.concatenate(heads, axis=-1)                       # (Bt*N, D)
    proj = jnp.dot(o.astype(cd), wproj_ref[0], preferred_element_type=jnp.float32)
    x = x + proj + bproj_ref[0]

    # ----- MLP (pre-norm) -----
    h2 = _ln(x, ln2w_ref[0], ln2b_ref[0]).astype(cd)
    m = jnp.dot(h2, wfc1_ref[0], preferred_element_type=jnp.float32) + bfc1_ref[0]
    m = _gelu_exact(m)
    m = jnp.dot(m.astype(cd), wfc2_ref[0], preferred_element_type=jnp.float32) + bfc2_ref[0]
    x = x + m

    x_scr[...] = x

    @pl.when(d == pl.num_programs(1) - 1)
    def _():
        o_ref[...] = _ln(x, nw_ref[...], nb_ref[...]).reshape(Bt, N, D).astype(o_ref.dtype)


def encoder_stack(tok, packed, norm_w, norm_b, num_heads, matmul_dtype):
    """tok: (Bm, N, D) -> (Bm, N, D). All blocks + final LayerNorm in ONE pallas_call."""
    Bm, N, D = tok.shape
    depth = packed["wqkv"].shape[0]
    # Batch-block so the per-layer weight slab is streamed once per Bt images.
    # TODO(synk): at real IJEPA sizes tune Bt (4-8) against VMEM (v7x: 64 MiB physical)
    # and consider K-tiling wfc1/wfc2 on v7x / pl.Buffered(3) on the fc streams on v6e.
    Bt = _choose_batch_block(Bm)

    order = ("ln1_w", "ln1_b", "wqkv", "bqkv", "wproj", "bproj",
             "ln2_w", "ln2_b", "wfc1", "bfc1", "wfc2", "bfc2")
    w_args = tuple(packed[k] for k in order)

    def depth_spec(a):
        ndim = a.ndim
        return pl.BlockSpec((1,) + a.shape[1:],
                            lambda b, d, _n=ndim: (d,) + (0,) * (_n - 1))

    in_specs = [pl.BlockSpec((Bt, N, D), lambda b, d: (b, 0, 0))]
    in_specs += [depth_spec(a) for a in w_args]
    in_specs += [pl.BlockSpec((1, D), lambda b, d: (0, 0)),
                 pl.BlockSpec((1, D), lambda b, d: (0, 0))]

    return pl.pallas_call(
        functools.partial(_encoder_kernel, num_heads=num_heads,
                          matmul_dtype=matmul_dtype),
        out_shape=jax.ShapeDtypeStruct((Bm, N, D), jnp.float32),
        grid=(Bm // Bt, depth),
        in_specs=in_specs,
        out_specs=pl.BlockSpec((Bt, N, D), lambda b, d: (b, 0, 0)),
        scratch_shapes=[pltpu.VMEM((Bt * N, D), jnp.float32)],
        compiler_params=pltpu.CompilerParams(
            dimension_semantics=("parallel", "arbitrary"),
            # Above v5e's 16 MiB scoped default, within v7x's 64 MiB physical VMEM.
            vmem_limit_bytes=64 * 1024 * 1024),
    )(tok, *w_args, norm_w.reshape(1, D), norm_b.reshape(1, D))


# ------------------------------- JAX glue -------------------------------------
def apply_masks(x, masks):
    """Same semantics as the PyTorch apply_masks (gather kept tokens, concat along batch)."""
    all_x = []
    for m in masks:
        idx = jnp.broadcast_to(m[:, :, None], (x.shape[0], m.shape[1], x.shape[2]))
        all_x.append(jnp.take_along_axis(x, idx, axis=1))
    return jnp.concatenate(all_x, axis=0)


def _pack_params(params, matmul_dtype):
    """Stack per-block params along a leading depth axis, all lane-dense.

    * wqkv  (depth, D, 3D), bqkv (depth, 1, 3D): hd**-0.5 folded into the q section.
    * wproj (depth, D, D) (rows = input features, head-major == concat order).
    * 1-D params reshaped to (depth, 1, X); big weights pre-cast to matmul_dtype.
    """
    D = params["embed_dim"]
    nh = params["num_heads"]
    hd = D // nh
    scale = float(hd) ** -0.5
    blocks = params["blocks"]
    depth = len(blocks)
    Dh = blocks[0]["wfc1"].shape[1]

    def stack(name):
        return jnp.stack([b[name] for b in blocks], axis=0)

    wqkv = stack("wqkv")                       # (depth, D, 3D), q = columns [0:D]
    wqkv = wqkv.at[:, :, :D].multiply(scale)
    bqkv = stack("bqkv")                       # (depth, 3D)
    bqkv = bqkv.at[:, :D].multiply(scale)

    return dict(
        ln1_w=stack("ln1_w").reshape(depth, 1, D),
        ln1_b=stack("ln1_b").reshape(depth, 1, D),
        wqkv=wqkv.astype(matmul_dtype),
        bqkv=bqkv.reshape(depth, 1, 3 * D).astype(jnp.float32),
        wproj=stack("wproj").astype(matmul_dtype),
        bproj=stack("bproj").reshape(depth, 1, D),
        ln2_w=stack("ln2_w").reshape(depth, 1, D),
        ln2_b=stack("ln2_b").reshape(depth, 1, D),
        wfc1=stack("wfc1").astype(matmul_dtype),
        bfc1=stack("bfc1").reshape(depth, 1, Dh),
        wfc2=stack("wfc2").astype(matmul_dtype),
        bfc2=stack("bfc2").reshape(depth, 1, D),
    )


def ijepa_encoder_forward(x, params, masks=None, matmul_dtype=jnp.bfloat16):
    """IJEPA_encoder.forward. matmul_dtype=jnp.float32 gives exact-f32 matmuls."""
    B, C, H, W = x.shape
    p = params["patch_size"]
    Hp, Wp = H // p, W // p
    N = Hp * Wp

    # Patch extraction (conv-as-matmul): (B, C, H, W) -> (B, N, C*p*p)
    # TODO(synk): for realistic image sizes, fold this transpose into the patch-embed
    # kernel (grid over (B, Hp) reading (1, C, p, W) slabs) to save one HBM round-trip.
    patches = (x.reshape(B, C, Hp, p, Wp, p)
                 .transpose(0, 2, 4, 1, 3, 5)
                 .reshape(B, N, C * p * p))

    tok = patch_embed(patches, params["patch_w"], params["patch_b"],
                      params["pos_embed"], matmul_dtype)       # (B, N, D)

    if masks is not None:
        tok = apply_masks(tok, masks)

    packed = _pack_params(params, matmul_dtype)
    return encoder_stack(tok, packed, params["norm_w"], params["norm_b"],
                         params["num_heads"], matmul_dtype)


def init_params(key, img_size=32, patch_size=8, in_chans=3, embed_dim=32,
                depth=2, num_heads=4, mlp_ratio=4.0):
    assert embed_dim % num_heads == 0
    N = (img_size // patch_size) ** 2
    hidden = int(embed_dim * mlp_ratio)
    K = in_chans * patch_size * patch_size
    keys = jax.random.split(key, 4 + depth)

    def nrm(k, shape, std=0.02):
        return (std * jax.random.normal(k, shape)).astype(jnp.float32)

    params = {
        "patch_size": patch_size,
        "embed_dim": embed_dim,
        "num_heads": num_heads,
        "patch_w": nrm(keys[0], (K, embed_dim)),             # conv weight, flattened & transposed
        "patch_b": jnp.zeros((embed_dim,), jnp.float32),
        "pos_embed": nrm(keys[1], (1, N, embed_dim)),        # trunc_normal(std=0.02) analogue
        "norm_w": jnp.ones((embed_dim,), jnp.float32),
        "norm_b": jnp.zeros((embed_dim,), jnp.float32),
        "blocks": [],
    }
    for i in range(depth):
        bk = jax.random.split(keys[4 + i], 4)
        params["blocks"].append({
            "ln1_w": jnp.ones((embed_dim,), jnp.float32),
            "ln1_b": jnp.zeros((embed_dim,), jnp.float32),
            "wqkv": nrm(bk[0], (embed_dim, 3 * embed_dim)),  # qkv_bias=True
            "bqkv": jnp.zeros((3 * embed_dim,), jnp.float32),
            "wproj": nrm(bk[1], (embed_dim, embed_dim)),
            "bproj": jnp.zeros((embed_dim,), jnp.float32),
            "ln2_w": jnp.ones((embed_dim,), jnp.float32),
            "ln2_b": jnp.zeros((embed_dim,), jnp.float32),
            "wfc1": nrm(bk[2], (embed_dim, hidden)),
            "bfc1": jnp.zeros((hidden,), jnp.float32),
            "wfc2": nrm(bk[3], (hidden, embed_dim)),
            "bfc2": jnp.zeros((embed_dim,), jnp.float32),
        })
    return params


if __name__ == "__main__":
    key = jax.random.PRNGKey(0)
    pkey, xkey = jax.random.split(key)

    img_size, patch_size, in_chans = 32, 8, 3
    embed_dim, depth, num_heads = 32, 2, 4
    params = init_params(pkey, img_size, patch_size, in_chans, embed_dim, depth, num_heads)

    x = jax.random.normal(xkey, (2, in_chans, img_size, img_size), dtype=jnp.float32)

    # forward without masks
    out = ijepa_encoder_forward(x, params)
    jax.block_until_ready(out)
    assert out.shape == (2, (img_size // patch_size) ** 2, embed_dim)
    assert bool(jnp.all(jnp.isfinite(out)))

    # forward with one mask (keep first 8 patches of each image)
    masks = [jnp.tile(jnp.arange(8, dtype=jnp.int32)[None, :], (x.shape[0], 1))]
    out_m = ijepa_encoder_forward(x, params, masks=masks)
    jax.block_until_ready(out_m)
    assert out_m.shape == (2, 8, embed_dim)
    assert bool(jnp.all(jnp.isfinite(out_m)))

    print("KERNEL_OK")
</pallas_src>

<mosaic_0001>
module attributes {stable_mosaic.version = 11 : i64} {
  func.func @_embed_kernel(%arg0: i32, %arg1: memref<2x16x192xf32, #tpu.memory_space<vmem>>, %arg2: memref<192x32xbf16, #tpu.memory_space<vmem>>, %arg3: memref<1x32xf32, #tpu.memory_space<vmem>>, %arg4: memref<16x32xf32, #tpu.memory_space<vmem>>, %arg5: memref<2x16x32xf32, #tpu.memory_space<vmem>>) attributes {dimension_semantics = [#tpu.dimension_semantics<parallel>], iteration_bounds = array<i64: 1>, scalar_prefetch = 0 : i64, scratch_operands = 0 : i64, tpu.core_type = #tpu.core_type<tc>, window_params = [{transform_indices = @transform_0, window_bounds = array<i64: 2, 16, 192>}, {pipeline_mode = #tpu.pipeline_mode<synchronous>, transform_indices = @transform_1, window_bounds = array<i64: 192, 32>}, {pipeline_mode = #tpu.pipeline_mode<synchronous>, transform_indices = @transform_2, window_bounds = array<i64: 1, 32>}, {pipeline_mode = #tpu.pipeline_mode<synchronous>, transform_indices = @transform_3, window_bounds = array<i64: 16, 32>}, {transform_indices = @transform_4, window_bounds = array<i64: 2, 16, 32>}]} {
    %c0 = arith.constant 0 : index
    %c0_0 = arith.constant 0 : index
    %c0_1 = arith.constant 0 : index
    %0 = vector.load %arg1[%c0, %c0_0, %c0_1] : memref<2x16x192xf32, #tpu.memory_space<vmem>>, vector<2x16x192xf32>
    %1 = vector.shape_cast %0 : vector<2x16x192xf32> to vector<32x192xf32>
    %2 = arith.truncf %1 : vector<32x192xf32> to vector<32x192xbf16>
    %c0_2 = arith.constant 0 : index
    %c0_3 = arith.constant 0 : index
    %3 = vector.load %arg2[%c0_2, %c0_3] : memref<192x32xbf16, #tpu.memory_space<vmem>>, vector<192x32xbf16>
    %cst = arith.constant dense<0.000000e+00> : vector<32x32xf32>
    %4 = tpu.matmul %2, %3, %cst {dimension_numbers = #tpu.dot_dimension_numbers<[1], [0], [0], [1], [0, 0, 1, 1], [], []>} : vector<32x192xbf16>, vector<192x32xbf16>, vector<32x32xf32> -> vector<32x32xf32>
    %c0_4 = arith.constant 0 : index
    %c0_5 = arith.constant 0 : index
    %5 = vector.load %arg3[%c0_4, %c0_5] : memref<1x32xf32, #tpu.memory_space<vmem>>, vector<1x32xf32>
    %6 = vector.broadcast %5 : vector<1x32xf32> to vector<32x32xf32>
    %7 = arith.addf %4, %6 : vector<32x32xf32>
    %8 = vector.shape_cast %7 : vector<32x32xf32> to vector<2x16x32xf32>
    %c0_6 = arith.constant 0 : index
    %c0_7 = arith.constant 0 : index
    %9 = vector.load %arg4[%c0_6, %c0_7] : memref<16x32xf32, #tpu.memory_space<vmem>>, vector<16x32xf32>
    %10 = vector.shape_cast %9 : vector<16x32xf32> to vector<1x16x32xf32>
    %11 = vector.broadcast %10 : vector<1x16x32xf32> to vector<2x16x32xf32>
    %12 = arith.addf %8, %11 : vector<2x16x32xf32>
    %c0_8 = arith.constant 0 : index
    %c0_9 = arith.constant 0 : index
    %c0_10 = arith.constant 0 : index
    %13 = vector.load %arg5[%c0_8, %c0_9, %c0_10] : memref<2x16x32xf32, #tpu.memory_space<vmem>>, vector<2x16x32xf32>
    tpu.vector_store %arg5[%c0_8, %c0_9, %c0_10], %12 {strides = array<i32>} : memref<2x16x32xf32, #tpu.memory_space<vmem>>, vector<2x16x32xf32>,
    return
  }
  func.func @transform_0(%arg0: i32) -> (i32, i32, i32) {
    %c0_i32 = arith.constant 0 : i32
    %c0_i32_0 = arith.constant 0 : i32
    %c0_i32_1 = arith.constant 0 : i32
    return %arg0, %c0_i32, %c0_i32_0 : i32, i32, i32
  }
  func.func @transform_1(%arg0: i32) -> (i32, i32) {
    %c0_i32 = arith.constant 0 : i32
    %c0_i32_0 = arith.constant 0 : i32
    %c0_i32_1 = arith.constant 0 : i32
    return %c0_i32, %c0_i32_0 : i32, i32
  }
  func.func @transform_2(%arg0: i32) -> (i32, i32) {
    %c0_i32 = arith.constant 0 : i32
    %c0_i32_0 = arith.constant 0 : i32
    %c0_i32_1 = arith.constant 0 : i32
    return %c0_i32, %c0_i32_0 : i32, i32
  }
  func.func @transform_3(%arg0: i32) -> (i32, i32) {
    %c0_i32 = arith.constant 0 : i32
    %c0_i32_0 = arith.constant 0 : i32
    %c0_i32_1 = arith.constant 0 : i32
    return %c0_i32, %c0_i32_0 : i32, i32
  }
  func.func @transform_4(%arg0: i32) -> (i32, i32, i32) {
    %c0_i32 = arith.constant 0 : i32
    %c0_i32_0 = arith.constant 0 : i32
    %c0_i32_1 = arith.constant 0 : i32
    return %arg0, %c0_i32, %c0_i32_0 : i32, i32, i32
  }
}

</mosaic_0001>

<bundles_post_ra>
// kernel: tpu_custom_call.1
= control target key start
LH: loop header
LB: loop body
LE: loop exit
PB: predicated region body
PF: predicated region fallthrough
CT: control target
= control target key end

     0   :  { %v294_v1 = vmov 0   ;;  %vm134_vm0 = vcmask 523264   ;;  %s423_s0 = inlined_call_operand.vmem [shape: f32[2,16,192], index: 0, kind: input, shape index: {}]   ;;  %s424_s1 = inlined_call_operand.vmem [shape: bf16[192,32], index: 1, kind: input, shape index: {}]   ;;  %s425_s2 = inlined_call_operand.vmem [shape: f32[1,32], index: 2, kind: input, shape index: {}]   ;;  %s426_s3 = inlined_call_operand.vmem [shape: f32[16,32], index: 3, kind: input, shape index: {}]   ;;  %s427_s4 = inlined_call_operand.hbm [shape: f32[2,16,32], index: 4, kind: output, shape index: {}]  }
   0x1   :  { %v260_v0 = vld [vmem:[%s424_s1 + $0x38] sm:$0xff]   ;;  %141 = vmatprep.subr.bf16.mxu0 %v294_v1  ;;  %232 = vmatprep.subr.bf16.mxu1 %v294_v1  ;;  %v261_v2 = vld [vmem:[%s424_s1 + $0x30] sm:$0xff]   ;;  %v262_v3 = vld [vmem:[%s424_s1 + $0x28] sm:$0xff]  }
   0x2   :  { %142 = vmatpush1.bf16.msra.mxu0 %v260_v0  ;;  %244 = vmatpush1.bf16.msra.mxu1 %v260_v0  ;;  %v263_v4 = vld [vmem:[%s424_s1 + $0x20] sm:$0xff]   ;;  %v20_v5 = vld [vmem:[%s423_s0 + $0x8] sm:$0xff]  ;;  %v22_v6 = vld [vmem:[%s423_s0 + $0x18] sm:$0xff] }
   0x3   :  { %143 = vmatprep.subr.bf16.mxu0 %v294_v1  ;;  %233 = vmatprep.subr.bf16.mxu1 %v294_v1  ;;  %v24_v7 = vld [vmem:[%s423_s0 + $0x28] sm:$0xff]  ;;  %v28_v8 = vpack.c.bf16 %v22_v6, %v20_v5  ;;  %v26_v9 = vld [vmem:[%s423_s0 + $0x38] sm:$0xff] }
   0x4   :  { %v264_v10 = vld [vmem:[%s424_s1 + $0x18] sm:$0xff]   ;;  %v30_v11 = vpack.c.bf16 %v26_v9, %v24_v7 }
   0x6   :  { %144 = vmatpush1.bf16.msra.mxu0 %v261_v2  ;;  %245 = vmatpush1.bf16.msra.mxu1 %v261_v2 }
   0x7   :  { %145 = vmatprep.subr.bf16.mxu0 %v294_v1  ;;  %234 = vmatprep.subr.bf16.mxu1 %v294_v1 }
   0xa   :  { %146 = vmatpush1.bf16.msra.mxu0 %v262_v3  ;;  %246 = vmatpush1.bf16.msra.mxu1 %v262_v3 }
   0xb   :  { %147 = vmatprep.subr.bf16.mxu0 %v294_v1  ;;  %235 = vmatprep.subr.bf16.mxu1 %v294_v1 }
   0xe   :  { %148 = vmatpush1.bf16.msra.mxu0 %v263_v4  ;;  %247 = vmatpush1.bf16.msra.mxu1 %v263_v4 }
   0xf   :  { %149 = vmatprep.subr.bf16.mxu0 %v294_v1  ;;  %236 = vmatprep.subr.bf16.mxu1 %v294_v1 }
  0x10   :  { %9 = vsyncpa [#allocation3], 0  ;;  %230 = vmatprep.mubr.msk.bf16.mxu0 %vm134_vm0, %v28_v8  ;;  %231 = vmatprep.mubr.msk.bf16.mxu1 %vm134_vm0, %v30_v11  ;;  %v265_v12 = vld [vmem:[%s424_s1 + $0x10] sm:$0xff]   ;;  %v266_v13 = vld [vmem:[%s424_s1 + $0x8] sm:$0xff]   ;;  %vm196_vm1 = vcmask 261120  }
  0x11   :  { %v267_v14 = vld [vmem:[%s424_s1] sm:$0xff]   ;;  %v268_v15 = vld [vmem:[%s424_s1 + $0x58] sm:$0xff]   ;;  %v269_v16 = vld [vmem:[%s424_s1 + $0x50] sm:$0xff]  }
  0x12   :  { %150 = vmatpush1.bf16.msra.mxu0 %v264_v10  ;;  %248 = vmatpush1.bf16.msra.mxu1 %v264_v10  ;;  %v270_v17 = vld [vmem:[%s424_s1 + $0x48] sm:$0xff]   ;;  %v271_v18 = vld [vmem:[%s424_s1 + $0x40] sm:$0xff]   ;;  %v21_v20 = vld [vmem:[%s423_s0 + $0x10] sm:$0xff] }
  0x13   :  { %151 = vmatprep.subr.bf16.mxu0 %v294_v1  ;;  %237 = vmatprep.subr.bf16.mxu1 %v294_v1  ;;  %v19_v19 = vld [vmem:[%s423_s0] sm:$0xff]  ;;  %v25_v22 = vld [vmem:[%s423_s0 + $0x30] sm:$0xff]  ;;  %v191_v36 = vld [vmem:[%s426_s3 + $0x8] sm:$0xff] }
  0x14   :  { %v23_v21 = vld [vmem:[%s423_s0 + $0x20] sm:$0xff]  ;;  %v27_v23 = vpack.c.bf16 %v21_v20, %v19_v19  ;;  %s295_s0 = smov [#allocation2]  }
  0x15   :  { %v29_v24 = vpack.c.bf16 %v25_v22, %v23_v21  ;;  %v217_v25 = vld [vmem:[%s425_s2] ss:$0 sm:$0xff]  ;;  %s206_s6 = sshll.u32 %s295_s0, 4  ;;  %s207_s6 = int_to_ptr.vmem [resolvable:$true] %s206_s6 }
  0x16   :  { %152 = vmatpush1.bf16.msra.mxu0 %v265_v12  ;;  %249 = vmatpush1.bf16.msra.mxu1 %v265_v12  ;;  %v190_v27 = vld [vmem:[%s426_s3] sm:$0xff]  ;;  %s272_s2 = scalar_lea.vmem %s207_s6, 512  ;;  %p277_p1 = scmp.lt.s32.totalorder %s207_s6, %s207_s6 }
  0x17   :  { %153 = vmatprep.subr.bf16.mxu0 %v294_v1  ;;  %238 = vmatprep.subr.bf16.mxu1 %v294_v1  ;;  %p273_p0 = scmp.ne.s32.totalorder %s207_s6, %s272_s2  ;;  %p278_p2 = scmp.lt.s32.totalorder %s272_s2, %s272_s2 }
  0x19   :  { %p279_p3 = por %p278_p2, %p277_p1 }
  0x1a   :  { %154 = vmatpush1.bf16.msra.mxu0 %v266_v13  ;;  %250 = vmatpush1.bf16.msra.mxu1 %v266_v13 }
  0x1b   :  { %155 = vmatprep.subr.bf16.mxu0 %v294_v1  ;;  %239 = vmatprep.subr.bf16.mxu1 %v294_v1  ;;  %p280_p4 = pnand %p279_p3, %p273_p0 }
  0x1e   :  { %156 = vmatpush1.bf16.msra.mxu0 %v267_v14  ;;  %251 = vmatpush1.bf16.msra.mxu1 %v267_v14 }
  0x1f   :  { %165 = vmatprep.subr.bf16.mxu0 %v294_v1  ;;  %240 = vmatprep.subr.bf16.mxu1 %v294_v1 }
  0x22   :  { %166 = vmatpush2.bf16.msra.mxu0 %v268_v15  ;;  %252 = vmatpush2.bf16.msra.mxu1 %v268_v15 }
  0x23   :  { %167 = vmatprep.subr.bf16.mxu0 %v294_v1  ;;  %241 = vmatprep.subr.bf16.mxu1 %v294_v1 }
  0x26   :  { %168 = vmatpush2.bf16.msra.mxu0 %v269_v16  ;;  %253 = vmatpush2.bf16.msra.mxu1 %v269_v16 }
  0x27   :  { %169 = vmatprep.subr.bf16.mxu0 %v294_v1  ;;  %242 = vmatprep.subr.bf16.mxu1 %v294_v1 }
  0x2a   :  { %170 = vmatpush2.bf16.msra.mxu0 %v270_v17  ;;  %254 = vmatpush2.bf16.msra.mxu1 %v270_v17 }
  0x2b   :  { %171 = vmatprep.subr.bf16.mxu0 %v294_v1  ;;  %243 = vmatprep.subr.bf16.mxu1 %v294_v1 }
  0x2e   :  { %172 = vmatpush2.bf16.msra.mxu0 %v271_v18  ;;  %255 = vmatpush2.bf16.msra.mxu1 %v271_v18 }
  0x31   :  { %174 = vmatmul.mubr.bf16.vlgmr.msra.gmra.mxu0 %v27_v23  ;;  %182 = vmatmul.mubr.bf16.vlgmr.msra.gmra.mxu1 %v29_v24 }
  0xf1   :  { %v175_v26 = vpop.f32.mrf.mxu0  ;;  %v183_v28 = vpop.f32.mrf.mxu1 }
  0xf2   :  { %v176_v29 = vadd.f32 %v217_v25, %v175_v26  ;;  %v184_v30 = vadd.f32 %v217_v25, %v183_v28 }
  0xf3   :  { %v177_v31 = vpop.f32.mrf.mxu0  ;;  %v185_v32 = vpop.f32.mrf.mxu1 }
  0xf4   :  { %v192_v33 = vadd.f32 %v190_v27, %v176_v29  ;;  %v194_v34 = vadd.f32 %v190_v27, %v184_v30 }
  0xf5   :  { %v178_v35 = vpop.f32.mrf.mxu0  ;;  %v186_v37 = vpop.f32.mrf.mxu1 }
  0xf6   :  { %197 = vst.msk [vmem:[#allocation2] sm:$0xff] %vm196_vm1, %v192_v33  ;;  %199 = vst.msk [vmem:[#allocation2 + $0x10] sm:$0xff] %vm196_vm1, %v194_v34  ;;  %v179_v38 = vadd.f32 %v217_v25, %v178_v35  ;;  %v187_v39 = vadd.f32 %v217_v25, %v186_v37 }
  0xf7   :  { %v180_v40 = vpop.f32.mrf.mxu0  ;;  %v188_v41 = vpop.f32.mrf.mxu1 }
  0xf8   :  { %v193_v42 = vadd.f32 %v191_v36, %v179_v38  ;;  %v195_v43 = vadd.f32 %v191_v36, %v187_v39 }
  0xfa   :  { %198 = vst.msk [vmem:[#allocation2 + $0x8] sm:$0xff] %vm196_vm1, %v193_v42  ;;  %200 = vst.msk [vmem:[#allocation2 + $0x18] sm:$0xff] %vm196_vm1, %v195_v43 }
  0xfb   :  { %283 = shalt.err (!%p280_p4)
}
  0xfc   :  { %s296_s3 = smov 128   ;;  %s297_s9 = smov 8  }
  0xfd   :  { %212 = dma.vmem_to_hbm [thread:$0]  %s207_s6, 512, %s427_s4, [#allocation3], %s296_s3, %s296_s3, %s297_s9  }
  0xfe   :  { %292 = dma.done.wait [#allocation3], 512  }
  0xff   :  { %293 = vsyncadd [#allocation3], 4294966784 }
 0x100   :  { %216 = vsyncpa [#allocation3], 1 }

</bundles_post_ra>
